<compile_context>
chip_gen: v6e
topology: v6e:2x2x1
jax: 0.10.0
libtpu: 0.0.40
codegen_flags: <defaults>
</compile_context>

<pallas_src>
import jax
import jax.numpy as jnp
from jax.experimental import pallas as pl
from jax.experimental.pallas import tpu as pltpu

_LANES = 128                        # vreg lane width
_MAX_TILE_LANES = 2048              # cap on the column (lane) extent of a block
_MAX_TILE_BYTES = 2 * 1024 * 1024   # ~2 MiB per block per buffer


def _round_up(x, m):
    return (x + m - 1) // m * m


def _sublane_pack(dtype):
    # Packed sublane tile: 8 rows for 4-byte dtypes, 16 for 2-byte, 32 for 1-byte.
    itemsize = jnp.dtype(dtype).itemsize
    return 8 * max(1, 4 // itemsize)


def _choose_tile(extent, unit, max_tile):
    """Pick a block extent along one axis.

    The block is either the full extent (always a legal block shape) or a
    multiple of `unit` (sublane pack / lane width -> unmasked stores).  It is
    as large as possible up to `max_tile`, but small enough to give at least
    two grid steps when the extent allows, so v7x's two TensorCores both get
    work; single-TC v5e/v6e are unaffected.
    """
    if extent <= 2 * unit:
        return extent
    max_tile = max(unit, (max_tile // unit) * unit)
    at_least_two_steps = _round_up(pl.cdiv(extent, 2), unit)
    return min(max_tile, at_least_two_steps)


def _broadcast_kernel(w_ref, o_ref):
    # softmax over a size-1 axis == 1.0  =>  output tile == weight[0, 0].
    # Pure VPU broadcast + full-lane store; no qk read, no MXU/EUP work.
    o_ref[...] = jnp.full(o_ref.shape, w_ref[0, 0], dtype=o_ref.dtype)


def _softmax1_matmul_kernel(w_ref, q_ref, o_ref):
    # Exact softmax-over-a-size-1-axis numerics:
    #   finite q    -> 1.0
    #   +/-inf, NaN -> NaN   (matches torch.softmax / jax.nn.softmax)
    q = q_ref[...]
    one_or_nan = (q - q) + jnp.ones((), dtype=q.dtype)
    o_ref[...] = (one_or_nan.astype(o_ref.dtype) * w_ref[0, 0]).astype(o_ref.dtype)


def model_forward(qk, attn_mask, weight, *, propagate_nonfinite=False):
    """Pallas equivalent of Model.forward.

    qk:        (B, S, D) with D == 1 (the size of the softmax axis).
    attn_mask: unused (exactly as in the PyTorch forward).
    weight:    (1, 1) array, the nn.Linear(1, 1).weight.
    propagate_nonfinite:
        False (default): assume finite qk; write-only broadcast of weight[0, 0].
        True: also read qk so +/-inf / NaN entries yield NaN outputs, exactly
        like torch.softmax would.
    """
    del attn_mask  # unused by the original forward as well
    B, S, D = qk.shape
    D_w, D_out = weight.shape
    assert D == D_w == 1 and D_out == 1, (
        "attn_weight @ weight only type-checks here for D == 1 and a (1, 1) weight")

    # NOTE: torch.matmul errors on mismatched dtypes; we promote instead
    # (benign for the canonical all-float32 module).
    out_dtype = jnp.result_type(qk.dtype, weight.dtype)
    w = weight.astype(out_dtype)          # (1, 1) scalar -> SMEM
    itemsize = jnp.dtype(out_dtype).itemsize
    sub = _sublane_pack(out_dtype)

    n = B * S                             # total output elements (D_out == 1)

    # Exact-size 2-D view of the output (no HBM padding, no post-kernel slice):
    #   * lane-dense (n // 128, 128) when n is a multiple of 128,
    #   * the logical (B, S) footprint otherwise (Pallas masks ragged blocks).
    # Either way the final reshape to (B, S, 1) is a contiguous, copy-free view.
    if n % _LANES == 0:
        shape2d = (n // _LANES, _LANES)
    else:
        shape2d = (B, S)
    R, C = shape2d

    tile_c = _choose_tile(C, _LANES, _MAX_TILE_LANES)
    max_tile_r = max(sub, _MAX_TILE_BYTES // (tile_c * itemsize))
    tile_r = _choose_tile(R, sub, max_tile_r)
    grid = (pl.cdiv(R, tile_r), pl.cdiv(C, tile_c))

    out_spec = pl.BlockSpec((tile_r, tile_c), lambda i, j: (i, j))
    compiler_params = pltpu.CompilerParams(
        # Pure broadcast / elementwise work: every grid axis is independent, so
        # both axes may be sharded across v7x's two TensorCores.
        dimension_semantics=("parallel", "parallel"),
        # Tiles are <= ~2 MiB per buffer; 32 MiB scoped VMEM is safe on v5e
        # (128 MiB physical), v6e (128 MiB) and v7x (64 MiB).
        vmem_limit_bytes=32 * 1024 * 1024,
    )
    # The (1, 1) weight lives in SMEM as a scalar: no VMEM vector load and no
    # extra DMA stream in the pipeline.
    w_spec = pl.BlockSpec(memory_space=pltpu.MemorySpace.SMEM)

    if propagate_nonfinite:
        q2d = qk.reshape(shape2d)         # contiguous, copy-free view
        out2d = pl.pallas_call(
            _softmax1_matmul_kernel,
            out_shape=jax.ShapeDtypeStruct(shape2d, out_dtype),
            grid=grid,
            in_specs=[w_spec,
                      pl.BlockSpec((tile_r, tile_c), lambda i, j: (i, j))],
            out_specs=out_spec,
            compiler_params=compiler_params,
        )(w, q2d)
    else:
        out2d = pl.pallas_call(
            _broadcast_kernel,
            out_shape=jax.ShapeDtypeStruct(shape2d, out_dtype),
            grid=grid,
            in_specs=[w_spec],
            out_specs=out_spec,
            compiler_params=compiler_params,
        )(w)

    # Copy-free reshape back to the logical (B, S, 1) output.
    return out2d.reshape(B, S, D_out)


if __name__ == "__main__":
    key = jax.random.PRNGKey(0)
    k_qk, k_mask, k_w = jax.random.split(key, 3)

    # Small shapes consistent with the module: the softmax axis must be 1 so
    # that attn_weight @ linear.weight (a (1, 1) matrix) is well-defined.
    B, S, D = 2, 8, 1
    qk = jax.random.normal(k_qk, (B, S, D), dtype=jnp.float32)
    attn_mask = jax.random.normal(k_mask, (B, S, D), dtype=jnp.float32)  # unused
    weight = jax.random.normal(k_w, (1, 1), dtype=jnp.float32)  # nn.Linear(1,1).weight

    ref = jax.nn.softmax(qk, axis=-1) @ weight

    # 1) Default write-only broadcast path (ragged: B*S = 16, not a multiple of 128).
    out = jax.block_until_ready(model_forward(qk, attn_mask, weight))
    assert out.shape == (B, S, 1), out.shape
    assert jnp.allclose(out, ref, atol=1e-6, rtol=1e-6)

    # 2) Lane-dense path: B*S a multiple of 128 -> (B*S/128, 128) slab, no padding.
    B2, S2 = 2, 256
    qk2 = jax.random.normal(k_qk, (B2, S2, 1), dtype=jnp.float32)
    ref2 = jax.nn.softmax(qk2, axis=-1) @ weight
    out2 = jax.block_until_ready(model_forward(qk2, None, weight))
    assert out2.shape == (B2, S2, 1), out2.shape
    assert jnp.allclose(out2, ref2, atol=1e-6, rtol=1e-6)

    # 3) Exact non-finite propagation (matches torch.softmax on +/-inf / NaN).
    qk3 = qk.at[0, 0, 0].set(jnp.nan).at[1, 3, 0].set(jnp.inf)
    ref3 = jax.nn.softmax(qk3, axis=-1) @ weight
    out3 = jax.block_until_ready(
        model_forward(qk3, attn_mask, weight, propagate_nonfinite=True))
    assert out3.shape == (B, S, 1), out3.shape
    assert jnp.allclose(out3, ref3, atol=1e-6, rtol=1e-6, equal_nan=True)

    print("KERNEL_OK")
</pallas_src>

<mosaic_0001>
module attributes {stable_mosaic.version = 11 : i64} {
  func.func @_broadcast_kernel(%arg0: i32, %arg1: i32, %arg2: memref<1x1xf32, #tpu.memory_space<smem>>, %arg3: memref<2x8xf32, #tpu.memory_space<vmem>>) attributes {dimension_semantics = [#tpu.dimension_semantics<parallel>, #tpu.dimension_semantics<parallel>], iteration_bounds = array<i64: 1, 1>, scalar_prefetch = 0 : i64, scratch_operands = 0 : i64, tpu.core_type = #tpu.core_type<tc>, window_params = [{transform_indices = @transform_0, window_bounds = array<i64: 1, 1>}, {transform_indices = @transform_1, window_bounds = array<i64: 2, 8>}]} {
    %c0 = arith.constant 0 : index
    %c0_0 = arith.constant 0 : index
    %0 = memref.load %arg2[%c0, %c0_0] : memref<1x1xf32, #tpu.memory_space<smem>>
    %1 = vector.broadcast %0 : f32 to vector<2x8xf32>
    %c0_1 = arith.constant 0 : index
    %c0_2 = arith.constant 0 : index
    %2 = vector.load %arg3[%c0_1, %c0_2] : memref<2x8xf32, #tpu.memory_space<vmem>>, vector<2x8xf32>
    tpu.vector_store %arg3[%c0_1, %c0_2], %1 {strides = array<i32>} : memref<2x8xf32, #tpu.memory_space<vmem>>, vector<2x8xf32>,
    return
  }
  func.func @transform_0(%arg0: i32, %arg1: i32) -> (i32, i32) {
    %c0_i32 = arith.constant 0 : i32
    %c0_i32_0 = arith.constant 0 : i32
    %c0_i32_1 = arith.constant 0 : i32
    return %c0_i32, %c0_i32_0 : i32, i32
  }
  func.func @transform_1(%arg0: i32, %arg1: i32) -> (i32, i32) {
    %c0_i32 = arith.constant 0 : i32
    return %arg0, %arg1 : i32, i32
  }
}

</mosaic_0001>

<bundles_post_ra>
// kernel: tpu_custom_call.1
= control target key start
LH: loop header
LB: loop body
LE: loop exit
PB: predicated region body
PF: predicated region fallthrough
CT: control target
= control target key end

     0   :  { %vm12_vm0 = vcmask 58368   ;;  %s68_s0 = inlined_call_operand.<no memory space> [shape: f32[1,1], index: 0, kind: input, shape index: {}]   ;;  %s69_s1 = inlined_call_operand.hbm [shape: f32[2,8], index: 1, kind: output, shape index: {}]  }
   0x1   :  { %v11_v0 = vstv %s68_s0 }
   0x2   :  { %7 = vsyncpa [#allocation4], 0  ;;  %13 = vst.msk [vmem:[#allocation3] sm:$0x3] %vm12_vm0, %v11_v0  ;;  %s51_s8 = smov [#allocation3]  }
   0x3   :  { %s20_s9 = sshll.u32 %s51_s8, 4  ;;  %s21_s9 = int_to_ptr.vmem [resolvable:$true] %s20_s9 }
   0x4   :  { %s29_s10 = scalar_lea.vmem %s21_s9, 32  ;;  %p34_p1 = scmp.lt.s32.totalorder %s21_s9, %s21_s9 }
   0x5   :  { %p30_p0 = scmp.ne.s32.totalorder %s21_s9, %s29_s10  ;;  %p35_p2 = scmp.lt.s32.totalorder %s29_s10, %s29_s10 }
   0x7   :  { %p36_p3 = por %p35_p2, %p34_p1 }
   0x9   :  { %p37_p4 = pnand %p36_p3, %p30_p0 }
   0xb   :  { %40 = shalt.err (!%p37_p4)
}
   0xc   :  { %23 = dma.vmem_to_hbm [thread:$0]  %s21_s9, 32, %s69_s1, [#allocation4]  }
   0xd   :  { %49 = dma.done.wait [#allocation4], 32  }
   0xe   :  { %50 = vsyncadd [#allocation4], 4294967264 }
   0xf   :  { %27 = vsyncpa [#allocation4], 1 }

</bundles_post_ra>
